<compile_context>
chip_gen: v6e
topology: v6e:2x2x1
jax: 0.10.0
libtpu: 0.0.40
codegen_flags: <defaults>
</compile_context>

<pallas_src>
import jax
import jax.numpy as jnp
from jax.experimental import pallas as pl
from jax.experimental.pallas import tpu as pltpu


_LANE = 128       # lane width
_SUBLANE = 8      # (8, 128) tile-rows; DMA chunk boundaries align to this
_MAX_CHUNKS = 8   # number of concurrent DMAs for the HBM->HBM copy


def _choose_slab(total: int):
    """Factor `total` as (rows, cols) with cols a multiple of 128 (lane-dense)
    and enough rows to split the copy into several DMA chunks.  Returns None
    when total is not a multiple of 128 (ragged fallback handled by caller)."""
    if total % _LANE != 0:
        return None
    for cols in (1024, 2048, 4096, 512, 256):
        if total % cols == 0:
            rows = total // cols
            if rows >= 2 * _SUBLANE and rows % _SUBLANE == 0:
                return rows, cols
    return total // _LANE, _LANE


def _row_chunks(rows: int):
    """Split `rows` into up to _MAX_CHUNKS chunks with boundaries aligned to
    whole (8, 128) tile-rows (except possibly a ragged final chunk)."""
    if rows <= _SUBLANE:
        return [(0, rows)]
    n = min(_MAX_CHUNKS, rows // _SUBLANE)
    base = (rows // n) // _SUBLANE * _SUBLANE
    chunks = []
    start = 0
    for _ in range(n - 1):
        chunks.append((start, base))
        start += base
    chunks.append((start, rows - start))
    return [c for c in chunks if c[1] > 0]


def _make_hbm_memcpy_kernel(chunks):
    """Kernel: issue all chunked HBM->HBM DMAs, then wait on all of them."""
    def kernel(x_hbm, o_hbm, sem):
        copies = []
        for idx, (r0, rc) in enumerate(chunks):
            cp = pltpu.make_async_copy(
                x_hbm.at[pl.ds(r0, rc), :],
                o_hbm.at[pl.ds(r0, rc), :],
                sem.at[idx],
            )
            cp.start()
            copies.append(cp)
        for cp in copies:
            cp.wait()
    return kernel


def _hbm_memcpy_2d(x2d: jax.Array) -> jax.Array:
    rows, cols = x2d.shape
    chunks = _row_chunks(rows)
    nbytes = x2d.size * jnp.dtype(x2d.dtype).itemsize
    return pl.pallas_call(
        _make_hbm_memcpy_kernel(chunks),
        out_shape=jax.ShapeDtypeStruct((rows, cols), x2d.dtype),
        in_specs=[pl.BlockSpec(memory_space=pl.ANY)],
        out_specs=pl.BlockSpec(memory_space=pl.ANY),
        scratch_shapes=[pltpu.SemaphoreType.DMA((len(chunks),))],
        cost_estimate=pl.CostEstimate(
            flops=0, transcendentals=0, bytes_accessed=2 * nbytes),
    )(x2d)


def flatten_layer(x: jax.Array) -> jax.Array:
    """Pallas implementation of FlattenLayer.forward: (B, ...) -> (B, prod(...))."""
    B = x.shape[0]
    F = 1
    for d in x.shape[1:]:
        F *= d
    total = B * F

    slab = _choose_slab(total)
    if slab is not None:
        # Lane-dense slab view: gives many tile-row-aligned rows so the copy
        # splits cleanly into several concurrent DMAs.
        rows, cols = slab
        x2d = x.reshape(rows, cols)
    else:
        # Ragged total (not a multiple of 128).  A direct HBM->HBM DMA does
        # not need lane density, so copy the (B, F) view and chunk on batch.
        x2d = x.reshape(B, F)

    out = _hbm_memcpy_2d(x2d)
    # Shape-only reshape back to the module's output shape.
    return out.reshape(B, F)


if __name__ == "__main__":
    key = jax.random.PRNGKey(0)
    # Small NCHW input consistent with how FlattenLayer is used in d2l nets.
    B, C, H, W = 2, 4, 16, 16
    x = jax.random.normal(key, (B, C, H, W), dtype=jnp.float32)

    y = flatten_layer(x)
    y = jax.block_until_ready(y)

    # Reference: plain reshape (what torch .view does for contiguous input).
    y_ref = x.reshape(B, C * H * W)
    assert y.shape == (B, C * H * W), y.shape
    assert y.dtype == x.dtype
    assert bool(jnp.all(y == y_ref))

    print("KERNEL_OK")
</pallas_src>

<mosaic_0001>
module attributes {stable_mosaic.version = 11 : i64} {
  func.func @kernel(%arg0: memref<16x128xf32, #tpu.memory_space<any>>, %arg1: memref<16x128xf32, #tpu.memory_space<any>>, %arg2: memref<2x!tpu.dma_semaphore, #tpu.memory_space<semaphore_mem>>) attributes {dimension_semantics = [], scalar_prefetch = 0 : i64, scratch_operands = 1 : i64, tpu.core_type = #tpu.core_type<tc>} {
    %c0_i32 = arith.constant 0 : i32
    %c0_i32_0 = arith.constant 0 : i32
    %c0_i32_1 = arith.constant 0 : i32
    %0 = tpu.memref_slice %arg0[%c0_i32_0, %c0_i32_1] : memref<16x128xf32, #tpu.memory_space<any>> -> memref<8x128xf32, #tpu.memory_space<any>>
    %c0_i32_2 = arith.constant 0 : i32
    %c0_i32_3 = arith.constant 0 : i32
    %1 = tpu.memref_slice %arg1[%c0_i32_2, %c0_i32_3] : memref<16x128xf32, #tpu.memory_space<any>> -> memref<8x128xf32, #tpu.memory_space<any>>
    %2 = tpu.memref_slice %arg2[%c0_i32] : memref<2x!tpu.dma_semaphore, #tpu.memory_space<semaphore_mem>> -> memref<1x!tpu.dma_semaphore, #tpu.memory_space<semaphore_mem>>
    %3 = tpu.memref_squeeze %2 : memref<1x!tpu.dma_semaphore, #tpu.memory_space<semaphore_mem>> -> memref<!tpu.dma_semaphore, #tpu.memory_space<semaphore_mem>>
    tpu.enqueue_dma source(%0 : memref<8x128xf32, #tpu.memory_space<any>>) target(%1 : memref<8x128xf32, #tpu.memory_space<any>>) target_semaphore(%3 : memref<!tpu.dma_semaphore, #tpu.memory_space<semaphore_mem>>)
    %c1_i32 = arith.constant 1 : i32
    %c8_i32 = arith.constant 8 : i32
    %c0_i32_4 = arith.constant 0 : i32
    %4 = tpu.memref_slice %arg0[%c8_i32, %c0_i32_4] : memref<16x128xf32, #tpu.memory_space<any>> -> memref<8x128xf32, #tpu.memory_space<any>>
    %c8_i32_5 = arith.constant 8 : i32
    %c0_i32_6 = arith.constant 0 : i32
    %5 = tpu.memref_slice %arg1[%c8_i32_5, %c0_i32_6] : memref<16x128xf32, #tpu.memory_space<any>> -> memref<8x128xf32, #tpu.memory_space<any>>
    %6 = tpu.memref_slice %arg2[%c1_i32] : memref<2x!tpu.dma_semaphore, #tpu.memory_space<semaphore_mem>> -> memref<1x!tpu.dma_semaphore, #tpu.memory_space<semaphore_mem>>
    %7 = tpu.memref_squeeze %6 : memref<1x!tpu.dma_semaphore, #tpu.memory_space<semaphore_mem>> -> memref<!tpu.dma_semaphore, #tpu.memory_space<semaphore_mem>>
    tpu.enqueue_dma source(%4 : memref<8x128xf32, #tpu.memory_space<any>>) target(%5 : memref<8x128xf32, #tpu.memory_space<any>>) target_semaphore(%7 : memref<!tpu.dma_semaphore, #tpu.memory_space<semaphore_mem>>)
    %c0_i32_7 = arith.constant 0 : i32
    %c0_i32_8 = arith.constant 0 : i32
    %c0_i32_9 = arith.constant 0 : i32
    %8 = tpu.memref_slice %arg0[%c0_i32_8, %c0_i32_9] : memref<16x128xf32, #tpu.memory_space<any>> -> memref<8x128xf32, #tpu.memory_space<any>>
    %c0_i32_10 = arith.constant 0 : i32
    %c0_i32_11 = arith.constant 0 : i32
    %9 = tpu.memref_slice %arg1[%c0_i32_10, %c0_i32_11] : memref<16x128xf32, #tpu.memory_space<any>> -> memref<8x128xf32, #tpu.memory_space<any>>
    %10 = tpu.memref_slice %arg2[%c0_i32_7] : memref<2x!tpu.dma_semaphore, #tpu.memory_space<semaphore_mem>> -> memref<1x!tpu.dma_semaphore, #tpu.memory_space<semaphore_mem>>
    %11 = tpu.memref_squeeze %10 : memref<1x!tpu.dma_semaphore, #tpu.memory_space<semaphore_mem>> -> memref<!tpu.dma_semaphore, #tpu.memory_space<semaphore_mem>>
    tpu.wait_dma2 semaphore(%11 : memref<!tpu.dma_semaphore, #tpu.memory_space<semaphore_mem>>) src(%8 : memref<8x128xf32, #tpu.memory_space<any>>) dst(%9 : memref<8x128xf32, #tpu.memory_space<any>>)
    %c1_i32_12 = arith.constant 1 : i32
    %c8_i32_13 = arith.constant 8 : i32
    %c0_i32_14 = arith.constant 0 : i32
    %12 = tpu.memref_slice %arg0[%c8_i32_13, %c0_i32_14] : memref<16x128xf32, #tpu.memory_space<any>> -> memref<8x128xf32, #tpu.memory_space<any>>
    %c8_i32_15 = arith.constant 8 : i32
    %c0_i32_16 = arith.constant 0 : i32
    %13 = tpu.memref_slice %arg1[%c8_i32_15, %c0_i32_16] : memref<16x128xf32, #tpu.memory_space<any>> -> memref<8x128xf32, #tpu.memory_space<any>>
    %14 = tpu.memref_slice %arg2[%c1_i32_12] : memref<2x!tpu.dma_semaphore, #tpu.memory_space<semaphore_mem>> -> memref<1x!tpu.dma_semaphore, #tpu.memory_space<semaphore_mem>>
    %15 = tpu.memref_squeeze %14 : memref<1x!tpu.dma_semaphore, #tpu.memory_space<semaphore_mem>> -> memref<!tpu.dma_semaphore, #tpu.memory_space<semaphore_mem>>
    tpu.wait_dma2 semaphore(%15 : memref<!tpu.dma_semaphore, #tpu.memory_space<semaphore_mem>>) src(%12 : memref<8x128xf32, #tpu.memory_space<any>>) dst(%13 : memref<8x128xf32, #tpu.memory_space<any>>)
    return
  }
}

</mosaic_0001>

<bundles_post_ra>
// kernel: tpu_custom_call.1
= control target key start
LH: loop header
LB: loop body
LE: loop exit
PB: predicated region body
PF: predicated region fallthrough
CT: control target
= control target key end

     0   :  { %s51_s9 = smov [#allocation2]   ;;  %s52_s10 = smov 131072   ;;  %s77_s0 = inlined_call_operand.hbm [shape: f32[16,128], index: 0, kind: input, shape index: {}]   ;;  %s78_s1 = inlined_call_operand.hbm [shape: f32[16,128], index: 1, kind: output, shape index: {}]  }
   0x1   :  { %s13_s8 = scalar_lea.hbm %s77_s0, 128  ;;  %s53_s11 = smov 0  }
   0x2   :  { %12 = dma.general %s77_s0, 128, %s78_s1, %s51_s9, %s52_s10, [#allocation4], %s53_s11, 0  }
   0x3   :  { %s14_s18 = scalar_lea.hbm %s78_s1, 128  ;;  %s54_s19 = smov [#allocation2 + $0x1]  }
   0x4   :  { %22 = dma.general %s13_s8, 128, %s14_s18, %s54_s19, %s52_s10, [#allocation6], %s53_s11, 0  }
   0x5   :  { %47 = dma.done.wait [#allocation2], 128 }
   0x6   :  { %48 = vsyncadd [#allocation2], 4294967168 }
   0x7   :  { %49 = dma.done.wait [#allocation2 + $0x1], 128 }
   0x8   :  { %50 = vsyncadd [#allocation2 + $0x1], 4294967168 }
   0x9   :  { %28 = vsyncmov [#allocation2] }
   0xc   :  { %s29_s20 = vpop.sfrf %28 }
   0xd   :  { %p41_p0 = scmp.ne.s32.totalorder %s29_s20, 0 }
   0xf   :  { %33 = shalt.err (%p41_p0)  }
  0x10   :  { %35 = vsyncmov [#allocation2 + $0x1] }
  0x13   :  { %s36_s21 = vpop.sfrf %35 }
  0x14   :  { %p42_p1 = scmp.ne.s32.totalorder %s36_s21, 0 }
  0x16   :  { %40 = shalt.err (%p42_p1)  }

</bundles_post_ra>
